<compile_context>
chip_gen: v7x
topology: tpu7x:2x2x1
jax: 0.10.0
libtpu: 0.0.40
codegen_flags: <defaults>
</compile_context>

<pallas_src>
import jax
import jax.numpy as jnp
from jax import lax
from jax.experimental import pallas as pl
from jax.experimental.pallas import tpu as pltpu


def _make_kernel(th, w, cin, cmid, cout, has_skip):
    """Per-(image, row-tile) kernel. Layout is channels x flattened pixels."""
    p = th * w               # pixels in the output tile
    pext = (th + 2) * w      # pixels including the 1-row halo above/below

    def kernel(*refs):
        if has_skip:
            (x_ref, halo_ref, wmask_ref, s1, t1, w1, s2, t2, w2, s3, t3, w3,
             bout, ws, o_ref) = refs
        else:
            (x_ref, halo_ref, wmask_ref, s1, t1, w1, s2, t2, w2, s3, t3, w3,
             bout, o_ref) = refs

        x_mid = x_ref[0]                      # (cin, th*w)  f32
        halo = halo_ref[0, 0]                 # (cin, 2*w)   f32: [row above | row below]

        # Extended row-major slab with a 1-row halo on each side (lane concat).
        x_ext = jnp.concatenate([halo[:, :w], x_mid, halo[:, w:]], axis=-1)  # (cin, pext)

        # BN1 + ReLU in f32 on the VPU, then 1x1 conv on the MXU in bf16.
        h1 = jnp.maximum(x_ext * s1[...] + t1[...], 0.0)
        y1 = jnp.dot(w1[...], h1.astype(jnp.bfloat16),
                     preferred_element_type=jnp.float32)                     # (cmid, pext)

        # BN2 + ReLU (conv1 bias already folded into t2 by the wrapper).
        h2 = jnp.maximum(y1 * s2[...] + t2[...], 0.0)

        # Conv2 zero-padding semantics: halo rows outside the image contribute 0.
        is_first = pl.program_id(1) == 0
        is_last = pl.program_id(1) == pl.num_programs(1) - 1
        pos = lax.broadcasted_iota(jnp.int32, (1, pext), 1)
        kill = jnp.logical_or(jnp.logical_and(is_first, pos < w),
                              jnp.logical_and(is_last, pos >= (th + 1) * w))
        h2 = jnp.where(kill, 0.0, h2)

        # 3x3 conv as a single im2col matmul: 9 lane-shifted taps of the
        # in-register h2, stacked along the contraction axis (no VMEM scratch).
        zcol = jnp.zeros((cmid, 1), jnp.float32)
        h2p = jnp.concatenate([zcol, h2, zcol], axis=-1)   # guard cols for +-1 x shifts
        left = wmask_ref[0:1, :]                           # 1.0 where x > 0
        right = wmask_ref[1:2, :]                          # 1.0 where x < w - 1
        taps = []
        for dy in (-1, 0, 1):
            for dx in (-1, 0, 1):
                off = (1 + dy) * w + dx + 1
                tap = h2p[:, off:off + p]                  # (cmid, p)
                if dx == -1:
                    tap = tap * left
                elif dx == 1:
                    tap = tap * right
                taps.append(tap)
        im2col = jnp.concatenate(taps, axis=0).astype(jnp.bfloat16)          # (9*cmid, p)
        y2 = jnp.dot(w2[...], im2col, preferred_element_type=jnp.float32)    # (cmid, p)

        # BN3 + ReLU (conv2 bias folded into t3), then 1x1 conv to cout.
        h3 = jnp.maximum(y2 * s3[...] + t3[...], 0.0)
        y3 = jnp.dot(w3[...], h3.astype(jnp.bfloat16),
                     preferred_element_type=jnp.float32)                     # (cout, p)

        if has_skip:
            res = jnp.dot(ws[...], x_mid.astype(jnp.bfloat16),
                          preferred_element_type=jnp.float32)                # (cout, p)
        else:
            res = x_mid                                                      # cin == cout

        o_ref[0] = y3 + res + bout[...]                                      # lane-dense store

    return kernel


def residual_forward(x_nchw, params, ins, outs, tile_h=8):
    """Residual block forward. Input/output are NCHW (PyTorch convention)."""
    x = x_nchw.astype(jnp.float32)
    n, c, hh, ww = x.shape
    assert c == ins
    cmid = outs // 2
    cout = outs
    has_skip = ins != outs

    th = tile_h if (hh % tile_h == 0) else hh     # rows per spatial tile
    ht = hh // th
    p = th * ww
    eps = 1e-5

    # --- fuse BN (eval mode) and conv biases in the wrapper (hoisted) ---
    def fuse(b):
        s = b["gamma"] / jnp.sqrt(b["var"] + eps)
        return s, b["beta"] - b["mean"] * s

    s1, t1 = fuse(params["bn1"])
    s2, t2 = fuse(params["bn2"])
    s3, t3 = fuse(params["bn3"])
    t2 = t2 + s2 * params["b1"]                   # fold conv1 bias into BN2 shift
    t3 = t3 + s3 * params["b2"]                   # fold conv2 bias into BN3 shift
    bout = params["b3"] + (params["bs"] if has_skip else 0.0)

    col = lambda v: v.reshape(-1, 1).astype(jnp.float32)
    s1c, t1c, s2c, t2c, s3c, t3c, boutc = map(col, (s1, t1, s2, t2, s3, t3, bout))

    # bf16 MXU operands (accumulation stays f32 via preferred_element_type).
    w1 = params["W1"].astype(jnp.bfloat16)                               # (cmid, ins)
    w2 = jnp.transpose(params["W2"], (0, 2, 3, 1)).reshape(
        cmid, 9 * cmid).astype(jnp.bfloat16)                             # (cmid, 9*cmid)
    w3 = params["W3"].astype(jnp.bfloat16)                               # (cout, cmid)

    # NCHW end-to-end: fold H,W into one lane-dense axis (free reshape, no transpose).
    x_flat = x.reshape(n, ins, hh * ww)

    # 1-row halo above/below every row tile (zeros at the image border); tiny side input.
    zrow = jnp.zeros((n, ins, 1, ww), jnp.float32)
    top = jnp.concatenate([zrow, x[:, :, th - 1:hh - 1:th, :]], axis=2)  # (n, ins, ht, ww)
    bot = jnp.concatenate([x[:, :, th::th, :], zrow], axis=2)            # (n, ins, ht, ww)
    halo = jnp.stack([top, bot], axis=3)                                  # (n, ins, ht, 2, ww)
    halo = jnp.transpose(halo, (0, 2, 1, 3, 4)).reshape(n, ht, ins, 2 * ww)

    # Column-boundary masks for the +-1 x-shift taps of the 3x3 conv.
    colid = jnp.arange(p, dtype=jnp.int32) % ww
    wmask = jnp.stack([(colid != 0), (colid != ww - 1)],
                      axis=0).astype(jnp.float32)                         # (2, p)

    inputs = [x_flat, halo, wmask, s1c, t1c, w1, s2c, t2c, w2, s3c, t3c, w3, boutc]
    if has_skip:
        inputs.append(params["Ws"].astype(jnp.bfloat16))                  # (cout, ins)

    def const_spec(a):
        shp = tuple(a.shape)
        zeros = (0,) * len(shp)
        return pl.BlockSpec(shp, lambda i, j, _z=zeros: _z)

    in_specs = [
        pl.BlockSpec((1, ins, p), lambda i, j: (i, 0, j)),
        pl.BlockSpec((1, 1, ins, 2 * ww), lambda i, j: (i, j, 0, 0)),
    ] + [const_spec(a) for a in inputs[2:]]

    kernel = _make_kernel(th, ww, ins, cmid, cout, has_skip)

    out = pl.pallas_call(
        kernel,
        out_shape=jax.ShapeDtypeStruct((n, cout, hh * ww), jnp.float32),
        grid_spec=pltpu.PrefetchScalarGridSpec(
            num_scalar_prefetch=0,
            grid=(n, ht),
            in_specs=in_specs,
            out_specs=pl.BlockSpec((1, cout, p), lambda i, j: (i, 0, j)),
        ),
        compiler_params=pltpu.CompilerParams(
            dimension_semantics=("parallel", "parallel"),
            vmem_limit_bytes=48 * 1024 * 1024,
        ),
    )(*inputs)

    return out.reshape(n, cout, hh, ww)


def _init_params(key, ins, outs):
    """Deterministic synthetic parameters in PyTorch-module form."""
    cmid = outs // 2
    keys = iter(jax.random.split(key, 24))

    def bn(c):
        return dict(
            gamma=1.0 + 0.1 * jax.random.normal(next(keys), (c,), jnp.float32),
            beta=0.1 * jax.random.normal(next(keys), (c,), jnp.float32),
            mean=0.1 * jax.random.normal(next(keys), (c,), jnp.float32),
            var=0.5 + jnp.abs(jax.random.normal(next(keys), (c,), jnp.float32)))

    p = dict(bn1=bn(ins), bn2=bn(cmid), bn3=bn(cmid))
    p["W1"] = 0.3 * jax.random.normal(next(keys), (cmid, ins), jnp.float32)
    p["b1"] = 0.1 * jax.random.normal(next(keys), (cmid,), jnp.float32)
    p["W2"] = 0.3 * jax.random.normal(next(keys), (cmid, cmid, 3, 3), jnp.float32)
    p["b2"] = 0.1 * jax.random.normal(next(keys), (cmid,), jnp.float32)
    p["W3"] = 0.3 * jax.random.normal(next(keys), (outs, cmid), jnp.float32)
    p["b3"] = 0.1 * jax.random.normal(next(keys), (outs,), jnp.float32)
    if ins != outs:
        p["Ws"] = 0.3 * jax.random.normal(next(keys), (outs, ins), jnp.float32)
        p["bs"] = 0.1 * jax.random.normal(next(keys), (outs,), jnp.float32)
    return p


def _ref_forward(x, p, ins, outs):
    """Pure-JAX NCHW reference for correctness checking (eval-mode BN)."""
    eps = 1e-5

    def bn(h, b):
        e = lambda v: v[None, :, None, None]
        return (h - e(b["mean"])) * (e(b["gamma"]) / jnp.sqrt(e(b["var"]) + eps)) + e(b["beta"])

    def conv(h, w, pad):
        return lax.conv_general_dilated(h, w, (1, 1), pad,
                                        dimension_numbers=("NCHW", "OIHW", "NCHW"))

    h = jnp.maximum(bn(x, p["bn1"]), 0.0)
    h = conv(h, p["W1"][:, :, None, None], "VALID") + p["b1"][None, :, None, None]
    h = jnp.maximum(bn(h, p["bn2"]), 0.0)
    h = conv(h, p["W2"], ((1, 1), (1, 1))) + p["b2"][None, :, None, None]
    h = jnp.maximum(bn(h, p["bn3"]), 0.0)
    h = conv(h, p["W3"][:, :, None, None], "VALID") + p["b3"][None, :, None, None]
    if ins != outs:
        res = conv(x, p["Ws"][:, :, None, None], "VALID") + p["bs"][None, :, None, None]
    else:
        res = x
    return h + res


if __name__ == "__main__":
    N, INS, OUTS, H, W = 2, 4, 8, 16, 16

    key = jax.random.PRNGKey(0)
    k_x, k_p = jax.random.split(key)
    x = jax.random.normal(k_x, (N, INS, H, W), jnp.float32)   # NCHW input
    params = _init_params(k_p, INS, OUTS)

    out = jax.block_until_ready(residual_forward(x, params, INS, OUTS))
    ref = jax.block_until_ready(_ref_forward(x, params, INS, OUTS))

    assert out.shape == (N, OUTS, H, W)
    # bf16 MXU operands (f32 accumulate) -> tolerance widened vs. pure f32.
    assert jnp.allclose(out, ref, rtol=5e-2, atol=1e-1), (
        f"max abs err {jnp.max(jnp.abs(out - ref))}")

    print("KERNEL_OK")
</pallas_src>

<mosaic_0001>
module attributes {stable_mosaic.version = 11 : i64} {
  func.func @kernel(%arg0: i32, %arg1: i32, %arg2: memref<1x4x128xf32, #tpu.memory_space<vmem>>, %arg3: memref<1x1x4x32xf32, #tpu.memory_space<vmem>>, %arg4: memref<2x128xf32, #tpu.memory_space<vmem>>, %arg5: memref<4x1xf32, #tpu.memory_space<vmem>>, %arg6: memref<4x1xf32, #tpu.memory_space<vmem>>, %arg7: memref<4x4xbf16, #tpu.memory_space<vmem>>, %arg8: memref<4x1xf32, #tpu.memory_space<vmem>>, %arg9: memref<4x1xf32, #tpu.memory_space<vmem>>, %arg10: memref<4x36xbf16, #tpu.memory_space<vmem>>, %arg11: memref<4x1xf32, #tpu.memory_space<vmem>>, %arg12: memref<4x1xf32, #tpu.memory_space<vmem>>, %arg13: memref<8x4xbf16, #tpu.memory_space<vmem>>, %arg14: memref<8x1xf32, #tpu.memory_space<vmem>>, %arg15: memref<8x4xbf16, #tpu.memory_space<vmem>>, %arg16: memref<1x8x128xf32, #tpu.memory_space<vmem>>) attributes {dimension_semantics = [#tpu.dimension_semantics<parallel>, #tpu.dimension_semantics<parallel>], iteration_bounds = array<i64: 2, 2>, scalar_prefetch = 0 : i64, scratch_operands = 0 : i64, tpu.core_type = #tpu.core_type<tc>, window_params = [{transform_indices = @transform_0, window_bounds = array<i64: 1, 4, 128>}, {transform_indices = @transform_1, window_bounds = array<i64: 1, 1, 4, 32>}, {pipeline_mode = #tpu.pipeline_mode<synchronous>, transform_indices = @transform_2, window_bounds = array<i64: 2, 128>}, {pipeline_mode = #tpu.pipeline_mode<synchronous>, transform_indices = @transform_3, window_bounds = array<i64: 4, 1>}, {pipeline_mode = #tpu.pipeline_mode<synchronous>, transform_indices = @transform_4, window_bounds = array<i64: 4, 1>}, {pipeline_mode = #tpu.pipeline_mode<synchronous>, transform_indices = @transform_5, window_bounds = array<i64: 4, 4>}, {pipeline_mode = #tpu.pipeline_mode<synchronous>, transform_indices = @transform_6, window_bounds = array<i64: 4, 1>}, {pipeline_mode = #tpu.pipeline_mode<synchronous>, transform_indices = @transform_7, window_bounds = array<i64: 4, 1>}, {pipeline_mode = #tpu.pipeline_mode<synchronous>, transform_indices = @transform_8, window_bounds = array<i64: 4, 36>}, {pipeline_mode = #tpu.pipeline_mode<synchronous>, transform_indices = @transform_9, window_bounds = array<i64: 4, 1>}, {pipeline_mode = #tpu.pipeline_mode<synchronous>, transform_indices = @transform_10, window_bounds = array<i64: 4, 1>}, {pipeline_mode = #tpu.pipeline_mode<synchronous>, transform_indices = @transform_11, window_bounds = array<i64: 8, 4>}, {pipeline_mode = #tpu.pipeline_mode<synchronous>, transform_indices = @transform_12, window_bounds = array<i64: 8, 1>}, {pipeline_mode = #tpu.pipeline_mode<synchronous>, transform_indices = @transform_13, window_bounds = array<i64: 8, 4>}, {transform_indices = @transform_14, window_bounds = array<i64: 1, 8, 128>}]} {
    %c0 = arith.constant 0 : index
    %c0_0 = arith.constant 0 : index
    %c0_1 = arith.constant 0 : index
    %0 = vector.load %arg2[%c0, %c0_0, %c0_1] : memref<1x4x128xf32, #tpu.memory_space<vmem>>, vector<1x4x128xf32>
    %1 = vector.shape_cast %0 : vector<1x4x128xf32> to vector<4x128xf32>
    %c0_2 = arith.constant 0 : index
    %c0_3 = arith.constant 0 : index
    %c0_4 = arith.constant 0 : index
    %c0_5 = arith.constant 0 : index
    %2 = vector.load %arg3[%c0_2, %c0_3, %c0_4, %c0_5] : memref<1x1x4x32xf32, #tpu.memory_space<vmem>>, vector<1x1x4x32xf32>
    %3 = vector.shape_cast %2 : vector<1x1x4x32xf32> to vector<4x32xf32>
    %4 = vector.extract_strided_slice %3 {offsets = [0, 0], sizes = [4, 16], strides = [1, 1]} : vector<4x32xf32> to vector<4x16xf32>
    %5 = vector.extract_strided_slice %3 {offsets = [0, 16], sizes = [4, 16], strides = [1, 1]} : vector<4x32xf32> to vector<4x16xf32>
    %6 = tpu.concatenate %4, %1, %5 in 1 : vector<4x16xf32>, vector<4x128xf32>, vector<4x16xf32> -> vector<4x160xf32>
    %c0_6 = arith.constant 0 : index
    %c0_7 = arith.constant 0 : index
    %7 = vector.load %arg5[%c0_6, %c0_7] : memref<4x1xf32, #tpu.memory_space<vmem>>, vector<4x1xf32>
    %8 = vector.broadcast %7 : vector<4x1xf32> to vector<4x160xf32>
    %9 = arith.mulf %6, %8 : vector<4x160xf32>
    %c0_8 = arith.constant 0 : index
    %c0_9 = arith.constant 0 : index
    %10 = vector.load %arg6[%c0_8, %c0_9] : memref<4x1xf32, #tpu.memory_space<vmem>>, vector<4x1xf32>
    %11 = vector.broadcast %10 : vector<4x1xf32> to vector<4x160xf32>
    %12 = arith.addf %9, %11 : vector<4x160xf32>
    %cst = arith.constant 0.000000e+00 : f32
    %13 = vector.broadcast %cst : f32 to vector<4x160xf32>
    %14 = arith.maximumf %12, %13 : vector<4x160xf32>
    %c0_10 = arith.constant 0 : index
    %c0_11 = arith.constant 0 : index
    %15 = vector.load %arg7[%c0_10, %c0_11] : memref<4x4xbf16, #tpu.memory_space<vmem>>, vector<4x4xbf16>
    %16 = arith.truncf %14 : vector<4x160xf32> to vector<4x160xbf16>
    %cst_12 = arith.constant dense<0.000000e+00> : vector<4x160xf32>
    %17 = tpu.matmul %15, %16, %cst_12 {dimension_numbers = #tpu.dot_dimension_numbers<[1], [0], [0], [1], [0, 0, 1, 1], [], []>} : vector<4x4xbf16>, vector<4x160xbf16>, vector<4x160xf32> -> vector<4x160xf32>
    %c0_13 = arith.constant 0 : index
    %c0_14 = arith.constant 0 : index
    %18 = vector.load %arg8[%c0_13, %c0_14] : memref<4x1xf32, #tpu.memory_space<vmem>>, vector<4x1xf32>
    %19 = vector.broadcast %18 : vector<4x1xf32> to vector<4x160xf32>
    %20 = arith.mulf %17, %19 : vector<4x160xf32>
    %c0_15 = arith.constant 0 : index
    %c0_16 = arith.constant 0 : index
    %21 = vector.load %arg9[%c0_15, %c0_16] : memref<4x1xf32, #tpu.memory_space<vmem>>, vector<4x1xf32>
    %22 = vector.broadcast %21 : vector<4x1xf32> to vector<4x160xf32>
    %23 = arith.addf %20, %22 : vector<4x160xf32>
    %cst_17 = arith.constant 0.000000e+00 : f32
    %24 = vector.broadcast %cst_17 : f32 to vector<4x160xf32>
    %25 = arith.maximumf %23, %24 : vector<4x160xf32>
    %c0_i32 = arith.constant 0 : i32
    %26 = arith.cmpi eq, %arg1, %c0_i32 : i32
    %c1_i32 = arith.constant 1 : i32
    %27 = arith.cmpi eq, %arg1, %c1_i32 : i32
    %28 = tpu.iota {dimensions = array<i32: 1>} : vector<1x160xi32>
    %c16_i32 = arith.constant 16 : i32
    %29 = vector.broadcast %c16_i32 : i32 to vector<1x160xi32>
    %30 = arith.cmpi slt, %28, %29 : vector<1x160xi32>
    %31 = vector.broadcast %26 : i1 to vector<1x160xi1>
    %32 = arith.andi %31, %30 : vector<1x160xi1>
    %c144_i32 = arith.constant 144 : i32
    %33 = vector.broadcast %c144_i32 : i32 to vector<1x160xi32>
    %34 = arith.cmpi sge, %28, %33 : vector<1x160xi32>
    %35 = vector.broadcast %27 : i1 to vector<1x160xi1>
    %36 = arith.andi %35, %34 : vector<1x160xi1>
    %37 = arith.ori %32, %36 : vector<1x160xi1>
    %cst_18 = arith.constant 0.000000e+00 : f32
    %38 = vector.shape_cast %37 : vector<1x160xi1> to vector<1x160xi1>
    %39 = vector.broadcast %38 : vector<1x160xi1> to vector<4x160xi1>
    %40 = vector.broadcast %cst_18 : f32 to vector<4x160xf32>
    %41 = arith.select %39, %40, %25 : vector<4x160xi1>, vector<4x160xf32>
    %cst_19 = arith.constant 0.000000e+00 : f32
    %42 = vector.broadcast %cst_19 : f32 to vector<4x1xf32>
    %43 = tpu.concatenate %42, %41, %42 in 1 : vector<4x1xf32>, vector<4x160xf32>, vector<4x1xf32> -> vector<4x162xf32>
    %c0_20 = arith.constant 0 : index
    %c0_21 = arith.constant 0 : index
    %44 = vector.load %arg4[%c0_20, %c0_21] : memref<2x128xf32, #tpu.memory_space<vmem>>, vector<1x128xf32>
    %c1 = arith.constant 1 : index
    %c0_22 = arith.constant 0 : index
    %45 = vector.load %arg4[%c1, %c0_22] : memref<2x128xf32, #tpu.memory_space<vmem>>, vector<1x128xf32>
    %46 = vector.extract_strided_slice %43 {offsets = [0, 0], sizes = [4, 128], strides = [1, 1]} : vector<4x162xf32> to vector<4x128xf32>
    %47 = vector.broadcast %44 : vector<1x128xf32> to vector<4x128xf32>
    %48 = arith.mulf %46, %47 : vector<4x128xf32>
    %49 = vector.extract_strided_slice %43 {offsets = [0, 1], sizes = [4, 128], strides = [1, 1]} : vector<4x162xf32> to vector<4x128xf32>
    %50 = vector.extract_strided_slice %43 {offsets = [0, 2], sizes = [4, 128], strides = [1, 1]} : vector<4x162xf32> to vector<4x128xf32>
    %51 = vector.broadcast %45 : vector<1x128xf32> to vector<4x128xf32>
    %52 = arith.mulf %50, %51 : vector<4x128xf32>
    %53 = vector.extract_strided_slice %43 {offsets = [0, 16], sizes = [4, 128], strides = [1, 1]} : vector<4x162xf32> to vector<4x128xf32>
    %54 = vector.broadcast %44 : vector<1x128xf32> to vector<4x128xf32>
    %55 = arith.mulf %53, %54 : vector<4x128xf32>
    %56 = vector.extract_strided_slice %43 {offsets = [0, 17], sizes = [4, 128], strides = [1, 1]} : vector<4x162xf32> to vector<4x128xf32>
    %57 = vector.extract_strided_slice %43 {offsets = [0, 18], sizes = [4, 128], strides = [1, 1]} : vector<4x162xf32> to vector<4x128xf32>
    %58 = vector.broadcast %45 : vector<1x128xf32> to vector<4x128xf32>
    %59 = arith.mulf %57, %58 : vector<4x128xf32>
    %60 = vector.extract_strided_slice %43 {offsets = [0, 32], sizes = [4, 128], strides = [1, 1]} : vector<4x162xf32> to vector<4x128xf32>
    %61 = vector.broadcast %44 : vector<1x128xf32> to vector<4x128xf32>
    %62 = arith.mulf %60, %61 : vector<4x128xf32>
    %63 = vector.extract_strided_slice %43 {offsets = [0, 33], sizes = [4, 128], strides = [1, 1]} : vector<4x162xf32> to vector<4x128xf32>
    %64 = vector.extract_strided_slice %43 {offsets = [0, 34], sizes = [4, 128], strides = [1, 1]} : vector<4x162xf32> to vector<4x128xf32>
    %65 = vector.broadcast %45 : vector<1x128xf32> to vector<4x128xf32>
    %66 = arith.mulf %64, %65 : vector<4x128xf32>
    %67 = tpu.concatenate %48, %49, %52, %55, %56, %59, %62, %63, %66 in 0 : vector<4x128xf32>, vector<4x128xf32>, vector<4x128xf32>, vector<4x128xf32>, vector<4x128xf32>, vector<4x128xf32>, vector<4x128xf32>, vector<4x128xf32>, vector<4x128xf32> -> vector<36x128xf32>
    %68 = arith.truncf %67 : vector<36x128xf32> to vector<36x128xbf16>
    %c0_23 = arith.constant 0 : index
    %c0_24 = arith.constant 0 : index
    %69 = vector.load %arg10[%c0_23, %c0_24] : memref<4x36xbf16, #tpu.memory_space<vmem>>, vector<4x36xbf16>
    %cst_25 = arith.constant dense<0.000000e+00> : vector<4x128xf32>
    %70 = tpu.matmul %69, %68, %cst_25 {dimension_numbers = #tpu.dot_dimension_numbers<[1], [0], [0], [1], [0, 0, 1, 1], [], []>} : vector<4x36xbf16>, vector<36x128xbf16>, vector<4x128xf32> -> vector<4x128xf32>
    %c0_26 = arith.constant 0 : index
    %c0_27 = arith.constant 0 : index
    %71 = vector.load %arg11[%c0_26, %c0_27] : memref<4x1xf32, #tpu.memory_space<vmem>>, vector<4x1xf32>
    %72 = vector.broadcast %71 : vector<4x1xf32> to vector<4x128xf32>
    %73 = arith.mulf %70, %72 : vector<4x128xf32>
    %c0_28 = arith.constant 0 : index
    %c0_29 = arith.constant 0 : index
    %74 = vector.load %arg12[%c0_28, %c0_29] : memref<4x1xf32, #tpu.memory_space<vmem>>, vector<4x1xf32>
    %75 = vector.broadcast %74 : vector<4x1xf32> to vector<4x128xf32>
    %76 = arith.addf %73, %75 : vector<4x128xf32>
    %cst_30 = arith.constant 0.000000e+00 : f32
    %77 = vector.broadcast %cst_30 : f32 to vector<4x128xf32>
    %78 = arith.maximumf %76, %77 : vector<4x128xf32>
    %c0_31 = arith.constant 0 : index
    %c0_32 = arith.constant 0 : index
    %79 = vector.load %arg13[%c0_31, %c0_32] : memref<8x4xbf16, #tpu.memory_space<vmem>>, vector<8x4xbf16>
    %80 = arith.truncf %78 : vector<4x128xf32> to vector<4x128xbf16>
    %cst_33 = arith.constant dense<0.000000e+00> : vector<8x128xf32>
    %81 = tpu.matmul %79, %80, %cst_33 {dimension_numbers = #tpu.dot_dimension_numbers<[1], [0], [0], [1], [0, 0, 1, 1], [], []>} : vector<8x4xbf16>, vector<4x128xbf16>, vector<8x128xf32> -> vector<8x128xf32>
    %c0_34 = arith.constant 0 : index
    %c0_35 = arith.constant 0 : index
    %82 = vector.load %arg15[%c0_34, %c0_35] : memref<8x4xbf16, #tpu.memory_space<vmem>>, vector<8x4xbf16>
    %83 = arith.truncf %1 : vector<4x128xf32> to vector<4x128xbf16>
    %cst_36 = arith.constant dense<0.000000e+00> : vector<8x128xf32>
    %84 = tpu.matmul %82, %83, %cst_36 {dimension_numbers = #tpu.dot_dimension_numbers<[1], [0], [0], [1], [0, 0, 1, 1], [], []>} : vector<8x4xbf16>, vector<4x128xbf16>, vector<8x128xf32> -> vector<8x128xf32>
    %85 = arith.addf %81, %84 : vector<8x128xf32>
    %c0_37 = arith.constant 0 : index
    %c0_38 = arith.constant 0 : index
    %86 = vector.load %arg14[%c0_37, %c0_38] : memref<8x1xf32, #tpu.memory_space<vmem>>, vector<8x1xf32>
    %87 = vector.broadcast %86 : vector<8x1xf32> to vector<8x128xf32>
    %88 = arith.addf %85, %87 : vector<8x128xf32>
    %c0_39 = arith.constant 0 : index
    %c0_40 = arith.constant 0 : index
    %c0_41 = arith.constant 0 : index
    %89 = vector.load %arg16[%c0_39, %c0_40, %c0_41] : memref<1x8x128xf32, #tpu.memory_space<vmem>>, vector<1x8x128xf32>
    %90 = vector.shape_cast %89 : vector<1x8x128xf32> to vector<8x128xf32>
    %91 = vector.shape_cast %88 : vector<8x128xf32> to vector<1x8x128xf32>
    tpu.vector_store %arg16[%c0_39, %c0_40, %c0_41], %91 {strides = array<i32>} : memref<1x8x128xf32, #tpu.memory_space<vmem>>, vector<1x8x128xf32>,
    return
  }
  func.func @transform_0(%arg0: i32, %arg1: i32) -> (i32, i32, i32) {
    %c0_i32 = arith.constant 0 : i32
    %c0_i32_0 = arith.constant 0 : i32
    return %arg0, %c0_i32, %arg1 : i32, i32, i32
  }
  func.func @transform_1(%arg0: i32, %arg1: i32) -> (i32, i32, i32, i32) {
    %c0_i32 = arith.constant 0 : i32
    %c0_i32_0 = arith.constant 0 : i32
    %c0_i32_1 = arith.constant 0 : i32
    return %arg0, %arg1, %c0_i32, %c0_i32_0 : i32, i32, i32, i32
  }
  func.func @transform_2(%arg0: i32, %arg1: i32) -> (i32, i32) {
    %c0_i32 = arith.constant 0 : i32
    %c0_i32_0 = arith.constant 0 : i32
    %c0_i32_1 = arith.constant 0 : i32
    return %c0_i32, %c0_i32_0 : i32, i32
  }
  func.func @transform_3(%arg0: i32, %arg1: i32) -> (i32, i32) {
    %c0_i32 = arith.constant 0 : i32
    %c0_i32_0 = arith.constant 0 : i32
    %c0_i32_1 = arith.constant 0 : i32
    return %c0_i32, %c0_i32_0 : i32, i32
  }
  func.func @transform_4(%arg0: i32, %arg1: i32) -> (i32, i32) {
    %c0_i32 = arith.constant 0 : i32
    %c0_i32_0 = arith.constant 0 : i32
    %c0_i32_1 = arith.constant 0 : i32
    return %c0_i32, %c0_i32_0 : i32, i32
  }
  func.func @transform_5(%arg0: i32, %arg1: i32) -> (i32, i32) {
    %c0_i32 = arith.constant 0 : i32
    %c0_i32_0 = arith.constant 0 : i32
    %c0_i32_1 = arith.constant 0 : i32
    return %c0_i32, %c0_i32_0 : i32, i32
  }
  func.func @transform_6(%arg0: i32, %arg1: i32) -> (i32, i32) {
    %c0_i32 = arith.constant 0 : i32
    %c0_i32_0 = arith.constant 0 : i32
    %c0_i32_1 = arith.constant 0 : i32
    return %c0_i32, %c0_i32_0 : i32, i32
  }
  func.func @transform_7(%arg0: i32, %arg1: i32) -> (i32, i32) {
    %c0_i32 = arith.constant 0 : i32
    %c0_i32_0 = arith.constant 0 : i32
    %c0_i32_1 = arith.constant 0 : i32
    return %c0_i32, %c0_i32_0 : i32, i32
  }
  func.func @transform_8(%arg0: i32, %arg1: i32) -> (i32, i32) {
    %c0_i32 = arith.constant 0 : i32
    %c0_i32_0 = arith.constant 0 : i32
    %c0_i32_1 = arith.constant 0 : i32
    return %c0_i32, %c0_i32_0 : i32, i32
  }
  func.func @transform_9(%arg0: i32, %arg1: i32) -> (i32, i32) {
    %c0_i32 = arith.constant 0 : i32
    %c0_i32_0 = arith.constant 0 : i32
    %c0_i32_1 = arith.constant 0 : i32
    return %c0_i32, %c0_i32_0 : i32, i32
  }
  func.func @transform_10(%arg0: i32, %arg1: i32) -> (i32, i32) {
    %c0_i32 = arith.constant 0 : i32
    %c0_i32_0 = arith.constant 0 : i32
    %c0_i32_1 = arith.constant 0 : i32
    return %c0_i32, %c0_i32_0 : i32, i32
  }
  func.func @transform_11(%arg0: i32, %arg1: i32) -> (i32, i32) {
    %c0_i32 = arith.constant 0 : i32
    %c0_i32_0 = arith.constant 0 : i32
    %c0_i32_1 = arith.constant 0 : i32
    return %c0_i32, %c0_i32_0 : i32, i32
  }
  func.func @transform_12(%arg0: i32, %arg1: i32) -> (i32, i32) {
    %c0_i32 = arith.constant 0 : i32
    %c0_i32_0 = arith.constant 0 : i32
    %c0_i32_1 = arith.constant 0 : i32
    return %c0_i32, %c0_i32_0 : i32, i32
  }
  func.func @transform_13(%arg0: i32, %arg1: i32) -> (i32, i32) {
    %c0_i32 = arith.constant 0 : i32
    %c0_i32_0 = arith.constant 0 : i32
    %c0_i32_1 = arith.constant 0 : i32
    return %c0_i32, %c0_i32_0 : i32, i32
  }
  func.func @transform_14(%arg0: i32, %arg1: i32) -> (i32, i32, i32) {
    %c0_i32 = arith.constant 0 : i32
    %c0_i32_0 = arith.constant 0 : i32
    return %arg0, %c0_i32, %arg1 : i32, i32, i32
  }
}

</mosaic_0001>

<bundles_post_ra>
// kernel: tpu_custom_call.1
= control target key start
LH: loop header
LB: loop body
LE: loop exit
PB: predicated region body
PF: predicated region fallthrough
CT: control target
= control target key end

     0   :  { %s1659_s0 = inlined_call_operand.vmem [shape: f32[2,4,256], index: 0, kind: input, shape index: {}]   ;;  %s1660_s1 = inlined_call_operand.vmem [shape: f32[2,2,4,32], index: 1, kind: input, shape index: {}]   ;;  %s1661_s2 = inlined_call_operand.vmem [shape: f32[2,128], index: 2, kind: input, shape index: {}]   ;;  %s1662_s3 = inlined_call_operand.vmem [shape: f32[4,1], index: 3, kind: input, shape index: {}]   ;;  %s1663_s4 = inlined_call_operand.vmem [shape: f32[4,1], index: 4, kind: input, shape index: {}]   ;;  %s1664_s5 = inlined_call_operand.vmem [shape: bf16[4,4], index: 5, kind: input, shape index: {}]   ;;  %s1665_s6 = inlined_call_operand.vmem [shape: f32[4,1], index: 6, kind: input, shape index: {}]   ;;  %s1666_s7 = inlined_call_operand.vmem [shape: f32[4,1], index: 7, kind: input, shape index: {}]   ;;  %s1667_s8 = inlined_call_operand.vmem [shape: bf16[4,36], index: 8, kind: input, shape index: {}]   ;;  %s1668_s9 = inlined_call_operand.vmem [shape: f32[4,1], index: 9, kind: input, shape index: {}]   ;;  %s1669_s10 = inlined_call_operand.vmem [shape: f32[4,1], index: 10, kind: input, shape index: {}]   ;;  %s1670_s11 = inlined_call_operand.vmem [shape: bf16[8,4], index: 11, kind: input, shape index: {}]   ;;  %s1671_s12 = inlined_call_operand.vmem [shape: f32[8,1], index: 12, kind: input, shape index: {}]   ;;  %s1672_s13 = inlined_call_operand.vmem [shape: bf16[8,4], index: 13, kind: input, shape index: {}]   ;;  %s1673_s14 = inlined_call_operand.hbm [shape: f32[2,8,256], index: 14, kind: output, shape index: {}]  }
   0x1   :  { %1682 = sst [smem:[#allocation13_spill]] %s1662_s3 }
   0x2   :  { %1683 = sst [smem:[#allocation14_spill]] %s1673_s14 }
   0x3   :  { %19 = vsyncpa [#allocation3], 0 }
   0x4   :  { %21 = vsyncpa [#allocation3 + $0x1], 0  ;;  %s1433_s29 = smov 0   ;;  %s1435_s30 = smov 0  }
   0x5   :  { %s1437_s15 = smov 0   ;;  %s1439_s16 = smov 0  }
   0x6   :  { %s1441_s17 = smov 0   ;;  %s1443_s18 = smov 0  }
   0x7   :  { %s1445_s19 = smov 0   ;;  %s1447_s20 = smov 0  }
   0x8 LB: > { %1684 = sst [smem:[#allocation5_spill]] %s1310_s29  ;;  %s1062_s21 = sadd.s32 4294967295, %s1338_s20   ;;  %s1338_s20 = sphi %s1447_s20, %s27_s20   ;;  %s1334_s19 = sphi %s1445_s19, %s1703_s19   ;;  %s1330_s18 = sphi %s1443_s18, %s1702_s18   ;;  %s1326_s17 = sphi %s1441_s17, %s1701_s17   ;;  %s1322_s16 = sphi %s1439_s16, %s1700_s16   ;;  %s1318_s15 = sphi %s1437_s15, %s1699_s15   ;;  %s1314_s30 = sphi %s1435_s30, %s1705_s30   ;;  %s1310_s29 = sphi %s1433_s29, %s1704_s29  }
   0x9   : > { %1685 = sst [smem:[#allocation6_spill]] %s1318_s15  ;;  %s1063_s22 = sadd.s32 4294967294, %s1338_s20  }
   0xa   : > { %1686 = sst [smem:[#allocation7_spill]] %s1330_s18  ;;  %s36_s23 = sadd.s32 1, %s1330_s18 }
   0xb   : > { %1687 = sst [smem:[#allocation8_spill]] %s1334_s19  ;;  %p37_p0 = scmp.ge.s32.totalorder %s36_s23, 2 }
   0xc   : > { %s39_s24 = sadd.s32 1, %s1334_s19  ;;  %p366_p1 = scmp.ne.s32.totalorder %s1318_s15, %s1314_s30 }
   0xd   : > { %p367_p2 = scmp.eq.s32.totalorder %s1062_s21, 3  ;;  %s1707_s23 = smov (%p37_p0, %s36_s23), 0 }
   0xe   : > { %1688 = sst [smem:[#allocation9_spill]] %s1707_s23  ;;  %s1709_s24 = smov (!%p37_p0, %s39_s24), %s1334_s19 }
   0xf   : > { %s352_s25 = ssub.s32 %s1330_s18, %s1707_s23  ;;  %p1484_p3 = por %p367_p2, %p366_p1 }
  0x10   : > { %p41_p4 = scmp.ge.s32.totalorder %s1709_s24, 2  ;;  %p372_p5 = scmp.ne.s32.totalorder %s1314_s30, %s1310_s29 }
  0x11   : > { %p373_p6 = scmp.eq.s32.totalorder %s1063_s22, 3  ;;  %p1066_p7 = scmp.ge.s32.totalorder %s1338_s20, 1 }
  0x12   : > { %s1711_s24 = smov (%p41_p4, %s1709_s24), 0  ;;  %p449_p9 = scmp.lt.s32.totalorder %s1338_s20, 5 }
  0x13   : > { %1690 = sst [smem:[#allocation10_spill]] %s1711_s24  ;;  %p1493_p8 = por %p373_p6, %p372_p5 }
  0x14   : > { %s351_s28 = ssub.s32 %s1334_s19, %s1711_s24  ;;  %s356_s21 = sadd.s32 1, %s1318_s15 }
  0x15   : > { %s1691_s27 = scalar_select %p1493_p8, 1, 0 }
  0x16   : > { %s353_s14 = sor.u32 %s352_s25, %s351_s28  ;;  %p450_p10 = pnand %p1066_p7, %p449_p9 }
  0x17   : > { %1692 = sst [smem:[#allocation11_spill]] %s1691_s27  ;;  %p354_p11 = scmp.eq.s32.totalorder %s353_s14, 0  ;;  %v1340_v1 = vmov (!%p450_p10), 0   ;;  %v540_v2 = vld [vmem:[%s1663_s4] sm:$0xf] (!%p450_p10)  ;;  %vm529_vm0 = vcmask (!%p450_p10), 130048   ;;  %v625_v22 = vlaneseq (!%p450_p10) }
  0x18   : > { %453 = sbr.rel (%p450_p10) target bundleno = 1108 (0x454), region = 76  ;;  %s1694_s3 = sld [smem:[#allocation13_spill]] (!%p450_p10)  ;;  %1202 = vset.pattern.permute.xlu0 (!%p450_p10), %v1340_v1  ;;  %596 = vmatprep.mubr.bf16.mxu1 (!%p450_p10), %v1340_v1  ;;  %v613_v3 = vld [vmem:[%s1666_s7] sm:$0xf] (!%p450_p10)  ;;  %vm557_vm1 = vcmask (!%p450_p10), 1041408   ;;  %vm553_vm2 = vcmask (!%p450_p10), 31744  }
  0x19   : > { %s1502_s23 = scalar_select %p354_p11, %s1318_s15, %s356_s21  }
  0x1a   : > { %p506_p12 = scmp.lt.s32.totalorder (!%p450_p10), %s1326_s17, 1  ;;  %p508_p13 = scmp.lt.s32.totalorder (!%p450_p10), %s1322_s16, 1  ;;  %1203 = vset.pattern.permute.xlu1 (!%p450_p10), %v1340_v1  ;;  %v605_v5 = vld [vmem:[%s1665_s6] sm:$0xf] (!%p450_p10)  ;;  %v626_v23 = vand.u32 (!%p450_p10), 127, %v625_v22  ;;  %vm656_vm9 = vcmask (!%p450_p10), 7168  }
  0x1b   : > { %1693 = sst [smem:[#allocation12_spill]] %s1502_s23  ;;  %s1341_s27 = smov (!%p450_p10), 16   ;;  %v550_v21 = vld [vmem:[%s1664_s5] sm:$0x3] (!%p450_p10)  ;;  %vm661_vm10 = vcmask (!%p450_p10), 269312   ;;  %v1347_v52 = vmov (!%p450_p10), 0.0  }
  0x1c   : > { %p623_p0 = scmp.eq.s32.totalorder (!%p450_p10), %s1322_s16, 0  ;;  %p624_p1 = scmp.eq.s32.totalorder (!%p450_p10), %s1322_s16, 1  ;;  %v627_v26 = vadd.s32 (!%p450_p10), 128, %v626_v23  ;;  %vm628_vm3 = vcmp.lt.s32.totalorder (!%p450_p10), %v626_v23, 16  ;;  %v1541_v41 = vld [vmem:[%s1661_s2] ss:$0 sm:$0xff] (!%p450_p10)  ;;  %1102 = vmatprep.subr.bf16.mxu0 (!%p450_p10), %v1347_v52 }
  0x1d   : > { %v1075_v42 = vld [vmem:[%s1661_s2 + $0x1] ss:$0 sm:$0xff] (!%p450_p10)  ;;  %s1343_s25 = smov (!%p450_p10), 2   ;;  %vm1355_vm11 = vmmov (!%p450_p10), 0   ;;  %vm709_vm12 = vcmask (!%p450_p10), 1039360   ;;  %vm718_vm13 = vcmask (!%p450_p10), 1031168  }
  0x1e   : > { %v532_v0 = vld [vmem:[%s1694_s3] sm:$0xf] (!%p450_p10)  ;;  %vm636_vm5 = vcmp.ge.s32.totalorder (!%p450_p10), %v627_v26, 144  ;;  %s1346_s3 = smov (!%p450_p10), 34   ;;  %1104 = vmatprep.mubr.msk.bf16.mxu0 (!%p450_p10), %vm1355_vm11, %v1347_v52  ;;  %vm729_vm14 = vcmask (!%p450_p10), 916480   ;;  %vm775_vm15 = vcmask (!%p450_p10), 1043456  }
  0x1f   : > { %535 = vperm.xlu0 %1202, %v532_v0   ;;  %s507_s22 = scalar_select %p506_p12, %s1326_s17, 1 }
  0x20   : > { %s509_s28 = scalar_select %p508_p13, %s1322_s16, 1 }
  0x21   : > { %s1068_s21 = sshll.u32 %s507_s22, 1  ;;  %s503_s14 = sand.u32 1, %s1314_s30  }
  0x22   : > { %s511_s29 = sadd.s32 %s1068_s21, %s509_s28  ;;  %s1342_s21 = smov 1  }
  0x23   : > { %543 = vperm.xlu0 %1202, %v540_v2   ;;  %s1069_s18 = sshll.u32 %s511_s29, 2  ;;  %s1344_s28 = smov 18  }
  0x24   : > { %s513_s15 = scalar_lea.vmem %s1659_s0, %s1069_s18  ;;  %s521_s19 = scalar_lea.vmem %s1660_s1, %s1069_s18 }
  0x25   : > { %v1520_v4 = vld [vmem:[%s513_s15] sm:$0xf]  ;;  %s630_s23 = scalar_select %p623_p0, 1, 0 }
  0x26   : > { %526 = vrot.lane.b32.xlu1 %v1520_v4, %s1341_s27  ;;  %v524_v6 = vld [vmem:[%s521_s19] sm:$0xf]  ;;  %s637_s24 = scalar_select %p624_p1, 1, 0 }
  0x27   : > { %616 = vperm.xlu0 %1202, %v613_v3   ;;  %v631_v25 = vstv %s630_s23  ;;  %s1345_s19 = smov 32   ;;  %s1349_s15 = smov 127  }
  0x28   : > { %v638_v27 = vstv %s637_s24  ;;  %vm632_vm4 = vcmp.eq.s32.totalorder %v631_v25, 1  ;;  %s1350_s23 = smov 126   ;;  %s1351_s24 = smov 112  }
  0x29   : > { %vm639_vm6 = vcmp.eq.s32.totalorder %v638_v27, 1  ;;  %vm633_vm7 = vmand %vm632_vm4, %vm628_vm3  ;;  %s1353_s29 = smov 110   ;;  %s1354_s18 = smov 94   ;;  %vm736_vm3 = vcmask 908288   ;;  %vm756_vm4 = vcmask 785408  }
  0x2a   : > { %608 = vperm.xlu1 %1203, %v605_v5   ;;  %vm641_vm8 = vmand %vm639_vm6, %vm636_vm5  ;;  %vm763_vm5 = vcmask 777216   ;;  %vm772_vm6 = vcmask 769024   ;;  %s1067_s22 = sshll.u32 %s503_s14, 3 }
  0x98   : > { %v527_v7 = vpop.permute.xlu1 %526 }
  0x99   : > { %v530_v8 = vsel %vm529_vm0, %v524_v6, %v527_v7  ;;  %v531_v9 = vsel %vm529_vm0, %v527_v7, %v524_v6  ;;  %vm747_vm0 = vcmask 900096  }
  0x9e   : > { %v536_v10 = vpop.permute.xlu0 %535 }
  0x9f   : > { %v538_v11 = vmul.f32 %v536_v10, %v530_v8  ;;  %v539_v12 = vmul.f32 %v536_v10, %v531_v9 }
  0xa2   : > { %v544_v13 = vpop.permute.xlu0 %543 }
  0xa3   : > { %v546_v14 = vadd.f32 %v544_v13, %v538_v11  ;;  %v547_v15 = vadd.f32 %v544_v13, %v539_v12 }
  0xa5   : > { %v548_v16 = vmax.f32 %v546_v14, 0.0  ;;  %v549_v17 = vmax.f32 %v547_v15, 0.0  ;;  %v838_v14 = vld [vmem:[%s1669_s10] sm:$0xf] }
  0xa6   : > { %v617_v31 = vpop.permute.xlu0 %616  ;;  %v831_v15 = vld [vmem:[%s1668_s9] sm:$0xf] }
  0xa7   : > { %v552_v18 = vpack.c.bf16 %v549_v17, %v549_v17  ;;  %v551_v19 = vpack.c.bf16 %v548_v16, %v548_v16  ;;  %v942_v16 = vld [vmem:[%s1671_s12] sm:$0xff] }
  0xa9   : > { %1072 = vmatprep.subr.msk.bf16.mxu1 %vm557_vm1, %v552_v18  ;;  %v559_v20 = vsel %vm557_vm1, %v551_v19, 0  ;;  %v609_v24 = vpop.permute.xlu1 %608 }
  0xaa   : > { %565 = vmatpush1.bf16.msra.mxu1 %v559_v20 }
  0xab   : > { %1092 = vmatprep.subr.bf16.mxu1 %v1347_v52 }
  0xad   : > { %1073 = vmatmul.mubr.msk.bf16.vlgmr.msra.gmra.mrb[0].mxu1 %vm553_vm2, %v550_v21 }
  0xae   : > { %1098 = vmatprep.mubr.msk.bf16.mxu1 %vm1355_vm11, %v1347_v52 }
 0x180   : > { %v598_v28 = vpop.f32.mrb[0].mxu1 }
 0x181   : > { %v611_v29 = vmul.f32 %v609_v24, %v598_v28  ;;  %v600_v30 = vpop.f32.mrb[1].mxu1 }
 0x182   : > { %v612_v32 = vmul.f32 %v609_v24, %v600_v30  ;;  %v602_v33 = vpop.f32.mrb[2].mxu1 }
 0x183   : > { %v619_v34 = vadd.f32 %v617_v31, %v611_v29  ;;  %v603_v35 = vpop.f32.mrb[3].mxu1 }
 0x184   : > { %v620_v36 = vadd.f32 %v617_v31, %v612_v32 }
 0x185   : > { %v621_v37 = vmax.f32 %v619_v34, 0.0 }
 0x186   : > { %v622_v38 = vmax.f32 %v620_v36, 0.0 }
 0x187   : > { %v648_v39 = vsel %vm633_vm7, 0.0, %v621_v37  ;;  %vm784_vm7 = vcmask 293888  }
 0x188   : > { %652 = vrot.lane.b32.xlu1 %v648_v39, %s1342_s21  ;;  %v649_v40 = vsel %vm641_vm8, 0.0, %v622_v38 }
 0x189   : > { %654 = vrot.lane.b32.xlu0 %v649_v40, %s1342_s21  ;;  %s1352_s21 = smov 96  }
 0x18c   : > { %681 = vrot.lane.b32.xlu1 %v1541_v41, %s1341_s27  ;;  %s1348_s27 = smov 111  }
 0x18d   : > { %675 = vrot.lane.b32.xlu0 %v1075_v42, %s1343_s25  ;;  %s1356_s25 = smov 95  }
 0x190   : > { %686 = vrot.lane.b32.xlu1 %v1075_v42, %s1344_s28 }
 0x191   : > { %691 = vrot.lane.b32.xlu0 %v1541_v41, %s1345_s19 }
 0x194   : > { %696 = vrot.lane.b32.xlu1 %v1075_v42, %s1346_s3  ;;  %s505_s3 = scalar_lea.vmem [#allocation2], %s1067_s22 }
 0x1fa   : > { %v653_v43 = vpop.permute.xlu1 %652 }
 0x1fb   : > { %v1549_v44 = vsel %vm656_vm9, 0.0, %v653_v43  ;;  %v655_v45 = vpop.permute.xlu0 %654 }
 0x1fc   : > { %v657_v46 = vsel %vm656_vm9, %v653_v43, %v655_v45  ;;  %v703_v50 = vrot.slane %v1549_v44, 4  ;;  %v669_v29 = vmul.f32 %v1541_v41, %v1549_v44 }
 0x1fd   : > { %v662_v47 = vsel %vm661_vm10, %v657_v46, 0.0 }
 0x1fe   : > { %v682_v48 = vpop.permute.xlu1 %681  ;;  %v1204_v49 = vpack.i.bf16 %v662_v47, %v1549_v44  ;;  %v704_v51 = vrot.slane %v662_v47, 4 }
 0x1ff   : > { %v684_v53 = vmul.f32 %v682_v48, %v1549_v44  ;;  %v685_v54 = vmul.f32 %v682_v48, %v662_v47  ;;  %v676_v55 = vpop.permute.xlu0 %675 }
 0x200   : > { %v678_v56 = vmul.f32 %v676_v55, %v1549_v44  ;;  %v679_v57 = vmul.f32 %v676_v55, %v662_v47  ;;  %1205 = vrot.lane.b32.xlu1 %v1204_v49, %s1348_s27  ;;  %v1209_v58 = vpack.i.bf16 %v704_v51, %v703_v50  ;;  %s966_s27 = sshll.u32 %s505_s3, 4  ;;  %s1608_s27 = int_to_ptr.vmem [resolvable:$true] %s966_s27 }
 0x201   : > { %v723_v59 = vrot.slane %v684_v53, 4  ;;  %v724_v60 = vrot.slane %v685_v54, 4 }
 0x202   : > { %v1214_v61 = vpack.i.bf16 %v679_v57, %v678_v56  ;;  %1210 = vrot.lane.b32.xlu0 %v1209_v58, %s1349_s15  ;;  %v687_v62 = vpop.permute.xlu1 %686 }
 0x203   : > { %v689_v63 = vmul.f32 %v687_v62, %v1549_v44  ;;  %v690_v0 = vmul.f32 %v687_v62, %v662_v47  ;;  %v692_v1 = vpop.permute.xlu0 %691  ;;  %v1224_v2 = vpack.i.bf16 %v724_v60, %v723_v59  ;;  %v783_v59 = vld [vmem:[%s1667_s8] sm:$0x3]  ;;  %v849_v60 = vpack.c.bf16 %v1520_v4, %v1520_v4 }
 0x204   : > { %v694_v3 = vmul.f32 %v692_v1, %v1549_v44  ;;  %v695_v5 = vmul.f32 %v692_v1, %v662_v47  ;;  %1215 = vrot.lane.b32.xlu1 %v1214_v61, %s1350_s23  ;;  %v848_v62 = vld [vmem:[%s1672_s13] sm:$0xf] }
 0x205   : > { %v741_v6 = vrot.slane %v689_v63, 4  ;;  %v742_v7 = vrot.slane %v690_v0, 4  ;;  %v854_v61 = vsel %vm557_vm1, %v849_v60, 0 }
 0x206   : > { %v1219_v8 = vpack.i.bf16 %v695_v5, %v694_v3  ;;  %1225 = vrot.lane.b32.xlu0 %v1224_v2, %s1351_s24  ;;  %v697_v9 = vpop.permute.xlu1 %696  ;;  %1103 = vmatpush3.bf16.msra.mxu0 %v854_v61  ;;  %s1695_s24 = sld [smem:[#allocation14_spill]] }
 0x207   : > { %v699_v10 = vmul.f32 %v697_v9, %v1549_v44  ;;  %v700_v11 = vmul.f32 %v697_v9, %v662_v47  ;;  %v1229_v12 = vpack.i.bf16 %v742_v7, %v741_v6  ;;  %1108 = vmatprep.subr.bf16.mxu0 %v1347_v52 }
 0x208   : > { %1220 = vrot.lane.b32.xlu1 %v1219_v8, %s1352_s21 }
 0x209   : > { %v1239_v13 = vpack.i.bf16 %v700_v11, %v699_v10  ;;  %1105 = vmatmul.mubr.msk.bf16.vlgmr.msra.gmra.mrb[0].mxu0 %vm553_vm2, %v848_v62 }
 0x20a   : > { %1230 = vrot.lane.b32.xlu0 %v1229_v12, %s1353_s29  ;;  %1110 = vmatprep.mubr.msk.bf16.mxu0 %vm1355_vm11, %v1347_v52  ;;  %s1357_s29 = smov [#allocation2]  }
 0x20c   : > { %1240 = vrot.lane.b32.xlu1 %v1239_v13, %s1354_s18  ;;  %s1248_s18 = sshll.u32 %s1357_s29, 4  ;;  %s1249_s18 = int_to_ptr.vmem [resolvable:$false] %s1248_s18 }
 0x20d   : > { %s1250_s22 = scalar_lea.vmem %s1249_s18, 256  ;;  %p1251_p6 = scmp.lt.s32.totalorder %s1608_s27, %s1249_s18 }
 0x20e   : > { %1235 = vrot.lane.b32.xlu0 %v1209_v58, %s1356_s25  ;;  %s1080_s25 = sshll.u32 %s1326_s17, 1  ;;  %s1244_s17 = scalar_lea.vmem %s1608_s27, 128 }
 0x20f   : > { %s962_s28 = sadd.s32 %s1322_s16, %s1080_s25  ;;  %s951_s16 = scalar_lea.sflag [#allocation3], %s503_s14 }
 0x210   : > { %841 = vperm.xlu1 %1203, %v838_v14   ;;  %s1081_s19 = sshll.u32 %s962_s28, 7  ;;  %p1245_p2 = scmp.ne.s32.totalorder %s1608_s27, %s1244_s17 }
 0x211   : > { %s1606_s21 = scalar_lea.hbm %s1695_s24, %s1081_s19  ;;  %p1252_p7 = scmp.lt.s32.totalorder %s1250_s22, %s1244_s17 }
 0x212   : > { %834 = vperm.xlu0 %1202, %v831_v15   ;;  %p1246_p4 = pnand %p1245_p2, %p1484_p3 }
 0x213   : > { %p1253_p9 = por %p1252_p7, %p1251_p6 }
 0x214   : > { %p1247_p5 = pneg %p1246_p4 }
 0x216   : > { %945 = vperm.xlu0 %1202, %v942_v16   ;;  %p1254_p10 = pnand %p1253_p9, %p1247_p5 }
 0x272   : > { %v1206_v17 = vpop.permute.xlu1 %1205 }
 0x273   : > { %v1208_v38 = vunpack.i.h.bf16 %v1206_v17  ;;  %v1207_v39 = vunpack.i.l.bf16 %v1206_v17 }
 0x274   : > { %v1211_v18 = vpop.permute.xlu0 %1210 }
 0x275   : > { %v1213_v19 = vunpack.i.h.bf16 %v1211_v18  ;;  %v1212_v20 = vunpack.i.l.bf16 %v1211_v18  ;;  %v737_v49 = vsel %vm736_vm3, %v1207_v39, %v1208_v38 }
 0x276   : > { %v1216_v21 = vpop.permute.xlu1 %1215 }
 0x277   : > { %v1218_v22 = vunpack.i.h.bf16 %v1216_v21  ;;  %v1217_v23 = vunpack.i.l.bf16 %v1216_v21  ;;  %v710_v25 = vsel %vm709_vm12, %v1212_v20, %v1213_v19 }
 0x278   : > { %v1226_v24 = vpop.permute.xlu0 %1225  ;;  %v776_v33 = vsel %vm775_vm15, %v669_v29, %v710_v25 }
 0x279   : > { %v1228_v26 = vunpack.i.h.bf16 %v1226_v24  ;;  %v1227_v27 = vunpack.i.l.bf16 %v1226_v24  ;;  %v719_v30 = vsel %vm718_vm13, %v1217_v23, %v1218_v22 }
 0x27a   : > { %v1221_v28 = vpop.permute.xlu1 %1220 }
 0x27b   : > { %v730_v31 = vsel %vm729_vm14, %v1227_v27, %v1228_v26  ;;  %v1223_v42 = vunpack.i.h.bf16 %v1221_v28  ;;  %v1222_v43 = vunpack.i.l.bf16 %v1221_v28 }
 0x27c   : > { %v1231_v32 = vpop.permute.xlu0 %1230  ;;  %v777_v34 = vsel %vm775_vm15, %v719_v30, %v730_v31 }
 0x27d   : > { %v1233_v35 = vunpack.i.h.bf16 %v1231_v32  ;;  %v1232_v36 = vunpack.i.l.bf16 %v1231_v32  ;;  %v780_v37 = vpack.c.bf16 %v777_v34, %v776_v33  ;;  %v757_v50 = vsel %vm756_vm4, %v1222_v43, %v1223_v42 }
 0x27e   : > { %v1241_v40 = vpop.permute.xlu1 %1240 }
 0x27f   : > { %v1243_v45 = vunpack.i.h.bf16 %v1241_v40  ;;  %v1242_v46 = vunpack.i.l.bf16 %v1241_v40  ;;  %1093 = vmatpush3.bf16.msra.mxu1 %v780_v37  ;;  %v748_v44 = vsel %vm747_vm0, %v1232_v36, %v1233_v35 }
 0x280   : > { %v1236_v41 = vpop.permute.xlu0 %1235  ;;  %1094 = vmatprep.subr.bf16.mxu1 %v1347_v52  ;;  %v778_v54 = vsel %vm775_vm15, %v737_v49, %v748_v44 }
 0x281   : > { %v1238_v47 = vunpack.i.h.bf16 %v1236_v41  ;;  %v1237_v48 = vunpack.i.l.bf16 %v1236_v41  ;;  %v773_v53 = vsel %vm772_vm6, %v1242_v46, %v1243_v45 }
 0x282   : > { %v782_v57 = vpack.c.bf16 %v773_v53, %v773_v53 }
 0x283   : > { %v764_v51 = vsel %vm763_vm5, %v1237_v48, %v1238_v47 }
 0x284   : > { %v779_v55 = vsel %vm775_vm15, %v757_v50, %v764_v51  ;;  %v789_v58 = vsel %vm557_vm1, %v782_v57, 0 }
 0x285   : > { %v781_v56 = vpack.c.bf16 %v779_v55, %v778_v54 }
 0x287   : > { %1095 = vmatpush3.bf16.msra.mxu1 %v781_v56 }
 0x288   : > { %1096 = vmatprep.subr.bf16.mxu1 %v1347_v52  ;;  %v846_v52 = vld [vmem:[%s1670_s11] sm:$0xf] }
 0x28b   : > { %1097 = vmatpush3.bf16.msra.mxu1 %v789_v58 }
 0x28e   : > { %1099 = vmatmul.mubr.msk.bf16.vlgmr.msra.gmra.mrb[4].mxu1 %vm784_vm7, %v783_v59 }
 0x28f   : > { %v842_v4 = vpop.permute.xlu1 %841 }
 0x291   : > { %v835_v63 = vpop.permute.xlu0 %834 }
 0x295   : > { %v946_v17 = vpop.permute.xlu0 %945 }
 0x2dc   : > { %v890_v10 = vpop.f32.mrb[0].mxu0 }
 0x2dd   : > { %v1106_v11 = vpop.f32.mrb[1].mxu0 }
 0x2de   : > { %v893_v12 = vpop.f32.mrb[2].mxu0 }
 0x2df   : > { %v1107_v13 = vpop.f32.mrb[3].mxu0 }
 0x361   : > { %v825_v0 = vpop.f32.mrb[4].mxu1 }
 0x362   : > { %v837_v1 = vmul.f32 %v835_v63, %v825_v0  ;;  %v1100_v2 = vpop.f32.mrb[5].mxu1 }
 0x363   : > { %v828_v3 = vpop.f32.mrb[6].mxu1 }
 0x364   : > { %v844_v5 = vadd.f32 %v842_v4, %v837_v1  ;;  %v1101_v6 = vpop.f32.mrb[7].mxu1 }
 0x366   : > { %v845_v7 = vmax.f32 %v844_v5, 0.0 }
 0x368   : > { %v847_v8 = vpack.c.bf16 %v845_v7, %v845_v7 }
 0x36a   : > { %v900_v9 = vsel %vm557_vm1, %v847_v8, 0 }
 0x36b   : > { %1109 = vmatpush3.bf16.msra.mxu0 %v900_v9 }
 0x36e   : > { %1111 = vmatmul.mubr.msk.bf16.vlgmr.msra.gmra.mrb[4].mxu0 %vm553_vm2, %v846_v52 }
 0x441   : > { %v936_v14 = vpop.f32.mrb[4].mxu0 }
 0x442   : > { %v937_v15 = vadd.f32 %v936_v14, %v890_v10  ;;  %v1112_v16 = vpop.f32.mrb[5].mxu0 }
 0x443   : > { %v939_v18 = vpop.f32.mrb[6].mxu0 }
 0x444   : > { %v948_v19 = vadd.f32 %v946_v17, %v937_v15  ;;  %v1113_v20 = vpop.f32.mrb[7].mxu0 }
 0x446   : > { %949 = vst [vmem:[%s505_s3] sm:$0xff] %v948_v19 }
 0x447   : > { %1257 = shalt.err (!%p1254_p10)
}
 0x448   : > { %s1258_s14 = scalar_lea.hbm %s1606_s21, 128  ;;  %s1262_s19 = scalar_lea.hbm %s1695_s24, 512 }
 0x449   : > { %p1259_p11 = scmp.ne.s32.totalorder %s1606_s21, %s1258_s14  ;;  %p1263_p0 = scmp.lt.u32.totalorder %s1606_s21, %s1695_s24 }
 0x44a   : > { %p1264_p1 = scmp.lt.u32.totalorder %s1262_s19, %s1258_s14  ;;  %p1266_p4 = scmp.lt.u32.totalorder %s1258_s14, %s1606_s21 }
 0x44b   : > { %p1260_p12 = pnand %p1259_p11, %p1484_p3 }
 0x44c   : > { %p1265_p2 = por %p1264_p1, %p1263_p0 }
 0x44d   : > { %p1261_p13 = pneg %p1260_p12 }
 0x44e   : > { %p1267_p5 = por %p1266_p4, %p1265_p2 }
 0x450   : > { %p1268_p6 = pnand %p1267_p5, %p1261_p13 }
 0x452   : > { %1271 = shalt.err (!%p1268_p6)
}
 0x453   : > { %1114 = dma.vmem_to_hbm [thread:$0]  (%p1484_p3), %s1608_s27, 128, %s1606_s21, %s951_s16  }
 0x454 PF: > { %s1696_s23 = sld [smem:[#allocation5_spill]]  ;;  %p1120_p7 = scmp.ge.s32.totalorder %s1338_s20, 2 }
 0x456   : > { %p1117_p9 = pnand %p1120_p7, %p1493_p8 }
 0x45a   : > { %s978_s29 = sand.u32 1, %s1696_s23  }
 0x45b   : > { %s979_s18 = scalar_lea.sflag [#allocation3], %s978_s29 }
 0x45c   : > { %1305 = dma.done.wait (!%p1117_p9), %s979_s18, 128  }
 0x45d   : > { %1307 = vsyncadd (!%p1117_p9), %s979_s18, 4294967168  ;;  %s27_s20 = sadd.s32 1, %s1338_s20   ;;  %s1698_s22 = sld [smem:[#allocation6_spill]] }
 0x45e   : > { %p24_p10 = scmp.ge.s32.totalorder %s27_s20, 6   ;;  %s1699_s15 = sld [smem:[#allocation12_spill]] }
 0x45f   : > { %s1700_s16 = sld [smem:[#allocation7_spill]]  ;;  %s1701_s17 = sld [smem:[#allocation8_spill]] }
 0x460   : > { %s1702_s18 = sld [smem:[#allocation9_spill]]  ;;  %s1703_s19 = sld [smem:[#allocation10_spill]] }
 0x461   : > { %s1704_s29 = smov %s1314_s30  ;;  %26 = sbr.rel (!%p24_p10) target bundleno = 8 (0x8), region = 114 }
 0x463   : > { %s1705_s30 = smov %s1698_s22 }
 0x468   :  { %984 = vsyncpa [#allocation3], 1 }
 0x469   :  { %986 = vsyncpa [#allocation3 + $0x1], 1 }

</bundles_post_ra>
